<compile_context>
chip_gen: v7x
topology: tpu7x:2x2x1
jax: 0.10.0
libtpu: 0.0.40
codegen_flags: <defaults>
</compile_context>

<pallas_src>
import functools
import math

import jax
import jax.numpy as jnp
from jax.experimental import pallas as pl
from jax.experimental.pallas import tpu as pltpu


def _round_up(v: int, m: int) -> int:
    return ((v + m - 1) // m) * m


def _encoder_kernel(w_in_ref, w_h0_ref, w_h1_ref, w_out_ref, x_ref, o_ref, *,
                    chunk, n_chunks):
    """Fused 4-layer MLP on one feature-major batch tile.

    x_ref: (in_size, TILE_B), o_ref: (out_size, TILE_B); weights are PyTorch
    (out, in) and act as the LHS of every matmul.
    """
    w_in = w_in_ref[...]
    w_h0 = w_h0_ref[...]
    w_h1 = w_h1_ref[...]
    w_out = w_out_ref[...]
    cdt = x_ref.dtype  # compute dtype for MXU inputs (f32 or bf16)

    def run_chunk(start):
        xc = x_ref[:, pl.ds(start, chunk)]
        h = jnp.dot(w_in, xc, preferred_element_type=jnp.float32)
        h = jnp.maximum(h, 0.0).astype(cdt)          # ReLU (input layer)
        h = jnp.dot(w_h0, h, preferred_element_type=jnp.float32)
        h = jnp.maximum(h, 0.0).astype(cdt)          # ReLU (hidden 0)
        h = jnp.dot(w_h1, h, preferred_element_type=jnp.float32)
        h = jnp.maximum(h, 0.0).astype(cdt)          # ReLU (hidden 1)
        o_ref[:, pl.ds(start, chunk)] = jnp.dot(
            w_out, h, preferred_element_type=jnp.float32
        ).astype(o_ref.dtype)                        # output layer, no act

    if n_chunks <= 32:
        # Static, fully-unrolled chunk loop: static ref slices (zero-cost
        # views), intermediates stay vreg-resident, full LLO visibility.
        for c in range(n_chunks):
            run_chunk(c * chunk)
    else:
        # Very large tiles: bound code size with a partially unrolled loop.
        def body(c, carry):
            run_chunk(pl.multiple_of(c * chunk, 128))
            return carry
        jax.lax.fori_loop(0, n_chunks, body, 0, unroll=8)


def _encoder_pallas_fm(x_fm, w_input, w_hidden0, w_hidden1, w_output, *, tb):
    """Feature-major core: x_fm (in_size, padded_B) -> (out_size, padded_B) f32.

    Requires padded_B % tb == 0 and tb % 128 == 0.
    """
    in_size, padded_b = x_fm.shape
    hidden = w_input.shape[0]
    out_size = w_output.shape[0]
    assert tb % 128 == 0 and padded_b % tb == 0
    n_tiles = padded_b // tb

    # Lane-chunk size: multiple of 128, <= 512, divides the tile.
    chunk = math.gcd(tb, 512)
    n_chunks = tb // chunk

    flops = 2 * padded_b * (in_size * hidden + 2 * hidden * hidden
                            + hidden * out_size)
    bytes_accessed = (
        x_fm.dtype.itemsize * padded_b * in_size
        + 4 * padded_b * out_size
        + w_input.dtype.itemsize
        * (hidden * in_size + 2 * hidden * hidden + out_size * hidden))
    cost = pl.CostEstimate(flops=flops, transcendentals=0,
                           bytes_accessed=bytes_accessed)

    const_spec = lambda shape: pl.BlockSpec(shape, lambda i: (0, 0))
    kernel = functools.partial(_encoder_kernel, chunk=chunk, n_chunks=n_chunks)

    return pl.pallas_call(
        kernel,
        out_shape=jax.ShapeDtypeStruct((out_size, padded_b), jnp.float32),
        grid=(n_tiles,),
        in_specs=[
            const_spec((hidden, in_size)),    # W_in   (VMEM-resident)
            const_spec((hidden, hidden)),     # W_h0   (VMEM-resident)
            const_spec((hidden, hidden)),     # W_h1   (VMEM-resident)
            const_spec((out_size, hidden)),   # W_out  (VMEM-resident)
            pl.BlockSpec((in_size, tb), lambda i: (0, i)),   # x batch tile
        ],
        out_specs=pl.BlockSpec((out_size, tb), lambda i: (0, i)),
        compiler_params=pltpu.CompilerParams(
            dimension_semantics=("parallel",),
            vmem_limit_bytes=32 * 1024 * 1024,   # headroom for big tiles on v5e
        ),
        cost_estimate=cost,
    )(w_input, w_hidden0, w_hidden1, w_output, x_fm)


@functools.partial(jax.jit, static_argnames=("tile_b", "compute_dtype"))
def encoder_forward(x, w_input, w_hidden0, w_hidden1, w_output, *,
                    tile_b=8192, compute_dtype=jnp.float32):
    """PyTorch-contract forward: x (B, in_size) -> (B, out_size) float32.

    compute_dtype=jnp.bfloat16 enables the MXU-native fast path (f32 accumulate).
    """
    B, in_size = x.shape

    # Lane-aligned batch tile: big enough to amortize per-grid-step overhead,
    # clamped to the batch, and split so there are >= 2 grid steps whenever the
    # batch allows (keeps both v7x TensorCores busy).
    b_rounded = _round_up(max(B, 1), 128)
    tb = max(128, min(_round_up(tile_b, 128), b_rounded))
    if b_rounded >= 2 * 128 and tb >= b_rounded:
        tb = _round_up(b_rounded // 2, 128)
    padded_b = _round_up(B, tb)

    cdt = compute_dtype
    # Single fused cast + transpose + pad into feature-major layout
    # (no zeros + dynamic_update_slice round trip).
    x_fm = jnp.pad(x.astype(cdt).T, ((0, 0), (0, padded_b - B)))

    out_fm = _encoder_pallas_fm(
        x_fm, w_input.astype(cdt), w_hidden0.astype(cdt),
        w_hidden1.astype(cdt), w_output.astype(cdt), tb=tb)

    # Back to the PyTorch (B, out_size) contract; drop padding before transposing.
    return out_fm[:, :B].T


def _divisor_tile(padded_b: int, tile_b: int) -> int:
    """Largest multiple of 128 dividing padded_b, capped near tile_b, leaving
    >= 2 grid steps when padded_b allows (v7x megacore)."""
    m = padded_b // 128
    cap = max(1, min(_round_up(tile_b, 128) // 128, m))
    if m >= 2:
        cap = min(cap, max(1, m // 2))
    best = 1
    for d in range(1, m + 1):
        if m % d == 0 and d <= cap:
            best = d
    return best * 128


@functools.partial(jax.jit, static_argnames=("tile_b",))
def encoder_forward_feature_major(x_fm, w_input, w_hidden0, w_hidden1,
                                  w_output, *, tile_b=8192):
    """Feature-major contract: x_fm (in_size, B_pad) with B_pad % 128 == 0.

    Returns (out_size, B_pad) float32 — use when the caller keeps activations
    feature-major, eliminating all wrapper transpose/pad HBM traffic.
    """
    in_size, padded_b = x_fm.shape
    if padded_b % 128 != 0:
        raise ValueError("feature-major batch width must be a multiple of 128")
    cdt = x_fm.dtype
    tb = _divisor_tile(padded_b, tile_b)
    return _encoder_pallas_fm(
        x_fm, w_input.astype(cdt), w_hidden0.astype(cdt),
        w_hidden1.astype(cdt), w_output.astype(cdt), tb=tb)


def _init_params(key, in_size=6, out_size=36, hidden_out=30):
    # Deterministic synthetic parameters (PyTorch (out, in) layout, no biases).
    k0, k1, k2, k3 = jax.random.split(key, 4)
    scale = 0.1
    w_input = scale * jax.random.normal(k0, (hidden_out, in_size), jnp.float32)
    w_h0 = scale * jax.random.normal(k1, (hidden_out, hidden_out), jnp.float32)
    w_h1 = scale * jax.random.normal(k2, (hidden_out, hidden_out), jnp.float32)
    w_output = scale * jax.random.normal(k3, (out_size, hidden_out), jnp.float32)
    return w_input, w_h0, w_h1, w_output


def _reference_forward(x, w_input, w_h0, w_h1, w_output):
    # Plain-JAX reference mirroring the PyTorch module.
    h = jnp.maximum(x @ w_input.T, 0.0)
    h = jnp.maximum(h @ w_h0.T, 0.0)
    h = jnp.maximum(h @ w_h1.T, 0.0)
    return h @ w_output.T


if __name__ == "__main__":
    key = jax.random.PRNGKey(0)
    k_x, k_p, k_x2 = jax.random.split(key, 3)

    in_size, hidden, out_size = 6, 30, 36
    params = _init_params(k_p, in_size=in_size, out_size=out_size,
                          hidden_out=hidden)

    # 1) Small batch, f32 (module-like shapes).
    B = 8
    x = jax.random.normal(k_x, (B, in_size), jnp.float32)
    out = jax.block_until_ready(encoder_forward(x, *params))
    ref = _reference_forward(x, *params)
    assert out.shape == (B, out_size), out.shape
    assert jnp.allclose(out, ref, atol=1e-4, rtol=1e-4), "f32 mismatch (small)"

    # 2) Multi-tile / multi-chunk path, f32.
    B2 = 1200
    x2 = jax.random.normal(k_x2, (B2, in_size), jnp.float32)
    out2 = jax.block_until_ready(encoder_forward(x2, *params))
    ref2 = _reference_forward(x2, *params)
    assert out2.shape == (B2, out_size), out2.shape
    assert jnp.allclose(out2, ref2, atol=1e-4, rtol=1e-4), "f32 mismatch (tiled)"

    # 3) bf16 fast path (MXU-native, f32 accumulation) — loose tolerance.
    out_bf = jax.block_until_ready(
        encoder_forward(x, *params, compute_dtype=jnp.bfloat16))
    assert out_bf.shape == (B, out_size), out_bf.shape
    assert jnp.allclose(out_bf, ref, atol=5e-2, rtol=5e-2), "bf16 mismatch"

    # 4) Feature-major entry point (no wrapper transposes).
    x_fm = jnp.pad(x.T, ((0, 0), (0, 256 - B)))          # (6, 256)
    out_fm = jax.block_until_ready(
        encoder_forward_feature_major(x_fm, *params))
    assert out_fm.shape == (out_size, 256), out_fm.shape
    assert jnp.allclose(out_fm[:, :B].T, ref, atol=1e-4, rtol=1e-4), \
        "f32 mismatch (feature-major)"

    print("KERNEL_OK")
</pallas_src>

<mosaic_0001>
module attributes {stable_mosaic.version = 11 : i64} {
  func.func @_encoder_kernel(%arg0: i32, %arg1: memref<30x6xf32, #tpu.memory_space<vmem>>, %arg2: memref<30x30xf32, #tpu.memory_space<vmem>>, %arg3: memref<30x30xf32, #tpu.memory_space<vmem>>, %arg4: memref<36x30xf32, #tpu.memory_space<vmem>>, %arg5: memref<6x128xf32, #tpu.memory_space<vmem>>, %arg6: memref<36x128xf32, #tpu.memory_space<vmem>>) attributes {dimension_semantics = [#tpu.dimension_semantics<parallel>], iteration_bounds = array<i64: 1>, scalar_prefetch = 0 : i64, scratch_operands = 0 : i64, tpu.core_type = #tpu.core_type<tc>, window_params = [{pipeline_mode = #tpu.pipeline_mode<synchronous>, transform_indices = @transform_0, window_bounds = array<i64: 30, 6>}, {pipeline_mode = #tpu.pipeline_mode<synchronous>, transform_indices = @transform_1, window_bounds = array<i64: 30, 30>}, {pipeline_mode = #tpu.pipeline_mode<synchronous>, transform_indices = @transform_2, window_bounds = array<i64: 30, 30>}, {pipeline_mode = #tpu.pipeline_mode<synchronous>, transform_indices = @transform_3, window_bounds = array<i64: 36, 30>}, {transform_indices = @transform_4, window_bounds = array<i64: 6, 128>}, {transform_indices = @transform_5, window_bounds = array<i64: 36, 128>}]} {
    %c0 = arith.constant 0 : index
    %c0_0 = arith.constant 0 : index
    %0 = vector.load %arg1[%c0, %c0_0] : memref<30x6xf32, #tpu.memory_space<vmem>>, vector<30x6xf32>
    %c0_1 = arith.constant 0 : index
    %c0_2 = arith.constant 0 : index
    %1 = vector.load %arg2[%c0_1, %c0_2] : memref<30x30xf32, #tpu.memory_space<vmem>>, vector<30x30xf32>
    %c0_3 = arith.constant 0 : index
    %c0_4 = arith.constant 0 : index
    %2 = vector.load %arg3[%c0_3, %c0_4] : memref<30x30xf32, #tpu.memory_space<vmem>>, vector<30x30xf32>
    %c0_5 = arith.constant 0 : index
    %c0_6 = arith.constant 0 : index
    %3 = vector.load %arg4[%c0_5, %c0_6] : memref<36x30xf32, #tpu.memory_space<vmem>>, vector<36x30xf32>
    %c0_7 = arith.constant 0 : index
    %c0_8 = arith.constant 0 : index
    %4 = vector.load %arg5[%c0_7, %c0_8] : memref<6x128xf32, #tpu.memory_space<vmem>>, vector<6x128xf32>
    %cst = arith.constant dense<0.000000e+00> : vector<30x128xf32>
    %5 = tpu.matmul %0, %4, %cst {dimension_numbers = #tpu.dot_dimension_numbers<[1], [0], [0], [1], [0, 0, 1, 1], [], []>} : vector<30x6xf32>, vector<6x128xf32>, vector<30x128xf32> -> vector<30x128xf32>
    %cst_9 = arith.constant 0.000000e+00 : f32
    %6 = vector.broadcast %cst_9 : f32 to vector<30x128xf32>
    %7 = arith.maximumf %5, %6 : vector<30x128xf32>
    %cst_10 = arith.constant dense<0.000000e+00> : vector<30x128xf32>
    %8 = tpu.matmul %1, %7, %cst_10 {dimension_numbers = #tpu.dot_dimension_numbers<[1], [0], [0], [1], [0, 0, 1, 1], [], []>} : vector<30x30xf32>, vector<30x128xf32>, vector<30x128xf32> -> vector<30x128xf32>
    %cst_11 = arith.constant 0.000000e+00 : f32
    %9 = vector.broadcast %cst_11 : f32 to vector<30x128xf32>
    %10 = arith.maximumf %8, %9 : vector<30x128xf32>
    %cst_12 = arith.constant dense<0.000000e+00> : vector<30x128xf32>
    %11 = tpu.matmul %2, %10, %cst_12 {dimension_numbers = #tpu.dot_dimension_numbers<[1], [0], [0], [1], [0, 0, 1, 1], [], []>} : vector<30x30xf32>, vector<30x128xf32>, vector<30x128xf32> -> vector<30x128xf32>
    %cst_13 = arith.constant 0.000000e+00 : f32
    %12 = vector.broadcast %cst_13 : f32 to vector<30x128xf32>
    %13 = arith.maximumf %11, %12 : vector<30x128xf32>
    %cst_14 = arith.constant dense<0.000000e+00> : vector<36x128xf32>
    %14 = tpu.matmul %3, %13, %cst_14 {dimension_numbers = #tpu.dot_dimension_numbers<[1], [0], [0], [1], [0, 0, 1, 1], [], []>} : vector<36x30xf32>, vector<30x128xf32>, vector<36x128xf32> -> vector<36x128xf32>
    %c0_15 = arith.constant 0 : index
    %c0_16 = arith.constant 0 : index
    %15 = vector.load %arg6[%c0_15, %c0_16] : memref<36x128xf32, #tpu.memory_space<vmem>>, vector<36x128xf32>
    tpu.vector_store %arg6[%c0_15, %c0_16], %14 {strides = array<i32>} : memref<36x128xf32, #tpu.memory_space<vmem>>, vector<36x128xf32>,
    return
  }
  func.func @transform_0(%arg0: i32) -> (i32, i32) {
    %c0_i32 = arith.constant 0 : i32
    %c0_i32_0 = arith.constant 0 : i32
    %c0_i32_1 = arith.constant 0 : i32
    return %c0_i32, %c0_i32_0 : i32, i32
  }
  func.func @transform_1(%arg0: i32) -> (i32, i32) {
    %c0_i32 = arith.constant 0 : i32
    %c0_i32_0 = arith.constant 0 : i32
    %c0_i32_1 = arith.constant 0 : i32
    return %c0_i32, %c0_i32_0 : i32, i32
  }
  func.func @transform_2(%arg0: i32) -> (i32, i32) {
    %c0_i32 = arith.constant 0 : i32
    %c0_i32_0 = arith.constant 0 : i32
    %c0_i32_1 = arith.constant 0 : i32
    return %c0_i32, %c0_i32_0 : i32, i32
  }
  func.func @transform_3(%arg0: i32) -> (i32, i32) {
    %c0_i32 = arith.constant 0 : i32
    %c0_i32_0 = arith.constant 0 : i32
    %c0_i32_1 = arith.constant 0 : i32
    return %c0_i32, %c0_i32_0 : i32, i32
  }
  func.func @transform_4(%arg0: i32) -> (i32, i32) {
    %c0_i32 = arith.constant 0 : i32
    %c0_i32_0 = arith.constant 0 : i32
    return %c0_i32, %arg0 : i32, i32
  }
  func.func @transform_5(%arg0: i32) -> (i32, i32) {
    %c0_i32 = arith.constant 0 : i32
    %c0_i32_0 = arith.constant 0 : i32
    return %c0_i32, %arg0 : i32, i32
  }
}

</mosaic_0001>

<bundles_post_ra>
// kernel: encoder_forward.1
= control target key start
LH: loop header
LB: loop body
LE: loop exit
PB: predicated region body
PF: predicated region fallthrough
CT: control target
= control target key end

     0   :  { %vm51_vm0 = vcmask 1045504   ;;  %vm38_vm1 = vcmask 48128   ;;  %vm144_vm2 = vcmask 244736   ;;  %vm611_vm3 = vmmov 1   ;;  %s749_s4 = inlined_call_operand.vmem [shape: f32[6,128], index: 4, kind: input, shape index: {}]   ;;  %s750_s0 = inlined_call_operand.vmem [shape: f32[30,6], index: 0, kind: input, shape index: {}]   ;;  %s751_s1 = inlined_call_operand.vmem [shape: f32[30,30], index: 1, kind: input, shape index: {}]   ;;  %s752_s2 = inlined_call_operand.vmem [shape: f32[30,30], index: 2, kind: input, shape index: {}]   ;;  %s753_s3 = inlined_call_operand.vmem [shape: f32[36,30], index: 3, kind: input, shape index: {}]   ;;  %s754_s5 = inlined_call_operand.vmem [shape: f32[36,128], index: 5, kind: output, shape index: {}]  }
   0x1   :  { %v37_v0 = vld [vmem:[%s749_s4] sm:$0x3f]  ;;  %v21_v2 = vld [vmem:[%s750_s0 + $0x8] sm:$0xff]  ;;  %v22_v3 = vld [vmem:[%s750_s0 + $0x10] sm:$0xff]  ;;  %v612_v34 = vmov 0.0|0.0   ;;  %vm613_vm5 = vmmov 0  }
   0x2   :  { %v20_v1 = vld [vmem:[%s750_s0] sm:$0xff]  ;;  %521 = vmatprep.subr.msk.mxu0 %vm51_vm0, %v37_v0  ;;  %v23_v4 = vld [vmem:[%s750_s0 + $0x18] sm:$0x3f]  ;;  %vm667_vm4 = vmpackc.low %vm51_vm0, %vm611_vm3  ;;  %600 = vmatprep.subr.bf16.mxu1 %v612_v34  ;;  %v614_v35 = vmov 0.0  }
   0x3   :  { %523 = vmatprep.mubr.msk.f32.mxu0 %vm38_vm1, %v20_v1  ;;  %522 = vmatpush3.msk.msra.mxu0 %vm51_vm0, %v37_v0  ;;  %v24_v5 = vld [vmem:[%s751_s1] sm:$0xff]  ;;  %v25_v17 = vld [vmem:[%s751_s1 + $0x8] sm:$0xff]  ;;  %v26_v18 = vld [vmem:[%s751_s1 + $0x10] sm:$0xff] }
   0x4   :  { %524 = vmatmul.mubr.msk.f32.vlgmr.msra.gmra.mrb[0].mxu0 %vm38_vm1, %v21_v2  ;;  %v27_v19 = vld [vmem:[%s751_s1 + $0x18] sm:$0x3f]  ;;  %v28_v20 = vld [vmem:[%s752_s2] sm:$0xff]  ;;  %v29_v31 = vld [vmem:[%s752_s2 + $0x8] sm:$0xff]  ;;  %565 = vmatprep.mubr.msk.f32.mxu1 %vm613_vm5, %v614_v35 }
   0x5   :  { %526 = vmatprep.mubr.msk.f32.mxu0 %vm38_vm1, %v22_v3  ;;  %v30_v32 = vld [vmem:[%s752_s2 + $0x10] sm:$0xff]  ;;  %v31_v33 = vld [vmem:[%s752_s2 + $0x18] sm:$0x3f]  ;;  %v32_v46 = vld [vmem:[%s753_s3] sm:$0xff] }
   0x6   :  { %v33_v47 = vld [vmem:[%s753_s3 + $0x8] sm:$0xff]  ;;  %v34_v48 = vld [vmem:[%s753_s3 + $0x10] sm:$0xff]  ;;  %v35_v49 = vld [vmem:[%s753_s3 + $0x18] sm:$0xff] }
   0x7   :  { %v36_v50 = vld [vmem:[%s753_s3 + $0x20] sm:$0xf] }
   0x8   :  { %527 = vmatmul.mubr.msk.f32.gmra.mrb[2].mxu0 %vm38_vm1, %v23_v4 }
   0x9   :  { %537 = vmatprep.mubr.msk.f32.mxu0 %vm144_vm2, %v24_v5 }
  0xd7   :  { %v525_v6 = vpop.f32.mrb[0].mxu0 }
  0xd8   :  { %v141_v7 = vmax.f32 %v525_v6, 0.0  ;;  %v121_v8 = vpop.f32.mrb[1].mxu0 }
  0xd9   :  { %v140_v9 = vmax.f32 %v121_v8, 0.0 }
  0xdb   :  { %v580_v10 = vpack.c.bf16 %v141_v7, %v140_v9  ;;  %v528_v11 = vpop.f32.mrb[2].mxu0 }
  0xdc   :  { %v143_v12 = vmax.f32 %v528_v11, 0.0  ;;  %v131_v13 = vpop.f32.mrb[3].mxu0 }
  0xdd   :  { %v142_v14 = vmax.f32 %v131_v13, 0.0  ;;  %581 = vmatprep.subr.bf16.mxu0 %v580_v10 }
  0xde   :  { %583 = vmatpush3.bf16.msra.mxu0 %v580_v10 }
  0xdf   :  { %v584_v16 = vpack.c.bf16 %v143_v12, %v142_v14 }
  0xe1   :  { %586 = vmatprep.subr.msk.bf16.mxu0 %vm667_vm4, %v584_v16 }
  0xe2   :  { %589 = vmatpush3.bf16.msk.msra.mxu0 %vm667_vm4, %v584_v16 }
  0xe5   :  { %538 = vmatmul.mubr.msk.f32.vlgmr.msra.gmra.mrb[4].mxu0 %vm144_vm2, %v25_v17 }
  0xe6   :  { %540 = vmatprep.mubr.msk.f32.mxu0 %vm144_vm2, %v26_v18 }
  0xe9   :  { %541 = vmatmul.mubr.msk.f32.gmra.mrb[6].mxu0 %vm144_vm2, %v27_v19 }
  0xea   :  { %551 = vmatprep.mubr.msk.f32.mxu0 %vm144_vm2, %v28_v20 }
 0x1b8   :  { %v539_v21 = vpop.f32.mrb[4].mxu0 }
 0x1b9   :  { %v246_v22 = vmax.f32 %v539_v21, 0.0  ;;  %v226_v23 = vpop.f32.mrb[5].mxu0 }
 0x1ba   :  { %v245_v24 = vmax.f32 %v226_v23, 0.0 }
 0x1bc   :  { %v590_v25 = vpack.c.bf16 %v246_v22, %v245_v24  ;;  %v542_v26 = vpop.f32.mrb[6].mxu0 }
 0x1bd   :  { %v248_v27 = vmax.f32 %v542_v26, 0.0  ;;  %v236_v28 = vpop.f32.mrb[7].mxu0 }
 0x1be   :  { %v247_v29 = vmax.f32 %v236_v28, 0.0  ;;  %591 = vmatprep.subr.bf16.mxu0 %v590_v25 }
 0x1bf   :  { %593 = vmatpush3.bf16.msra.mxu0 %v590_v25 }
 0x1c0   :  { %v594_v30 = vpack.c.bf16 %v248_v27, %v247_v29 }
 0x1c2   :  { %596 = vmatprep.subr.msk.bf16.mxu0 %vm667_vm4, %v594_v30 }
 0x1c3   :  { %599 = vmatpush3.bf16.msk.msra.mxu0 %vm667_vm4, %v594_v30 }
 0x1c6   :  { %552 = vmatmul.mubr.msk.f32.vlgmr.msra.gmra.mrb[8].mxu0 %vm144_vm2, %v29_v31 }
 0x1c7   :  { %554 = vmatprep.mubr.msk.f32.mxu0 %vm144_vm2, %v30_v32 }
 0x1ca   :  { %555 = vmatmul.mubr.msk.f32.gmra.mrb[10].mxu0 %vm144_vm2, %v31_v33 }
 0x299   :  { %v553_v36 = vpop.f32.mrb[8].mxu0 }
 0x29a   :  { %v350_v37 = vmax.f32 %v553_v36, 0.0  ;;  %v330_v38 = vpop.f32.mrb[9].mxu0 }
 0x29b   :  { %v349_v39 = vmax.f32 %v330_v38, 0.0 }
 0x29d   :  { %v556_v40 = vpop.f32.mrb[10].mxu0  ;;  %v601_v41 = vpack.c.bf16 %v350_v37, %v349_v39 }
 0x29e   :  { %v352_v42 = vmax.f32 %v556_v40, 0.0  ;;  %v340_v43 = vpop.f32.mrb[11].mxu0 }
 0x29f   :  { %v351_v44 = vmax.f32 %v340_v43, 0.0  ;;  %602 = vmatpush3.bf16.msra.mxu1 %v601_v41 }
 0x2a0   :  { %603 = vmatprep.subr.bf16.mxu1 %v612_v34 }
 0x2a1   :  { %v604_v45 = vpack.c.bf16 %v352_v42, %v351_v44 }
 0x2a3   :  { %606 = vmatpush3.bf16.msk.msra.mxu1 %vm667_vm4, %v604_v45 }
 0x2a6   :  { %566 = vmatmul.mubr.msk.f32.vlgmr.msra.gmra.mrb[0].mxu1 %vm144_vm2, %v32_v46 }
 0x2a7   :  { %568 = vmatprep.mubr.msk.f32.mxu1 %vm613_vm5, %v614_v35 }
 0x2aa   :  { %569 = vmatmul.mubr.msk.f32.gmra.mrb[2].mxu1 %vm144_vm2, %v33_v47 }
 0x2ab   :  { %571 = vmatprep.mubr.msk.f32.mxu1 %vm613_vm5, %v614_v35 }
 0x2ae   :  { %572 = vmatmul.mubr.msk.f32.gmra.mrb[4].mxu1 %vm144_vm2, %v34_v48 }
 0x2af   :  { %574 = vmatprep.mubr.msk.f32.mxu1 %vm613_vm5, %v614_v35 }
 0x2b2   :  { %575 = vmatmul.mubr.msk.f32.gmra.mrb[6].mxu1 %vm144_vm2, %v35_v49 }
 0x2b3   :  { %577 = vmatprep.mubr.msk.f32.mxu1 %vm613_vm5, %v614_v35 }
 0x2b6   :  { %578 = vmatmul.mubr.msk.f32.gmra.mrb[8].mxu1 %vm144_vm2, %v36_v50 }
 0x379   :  { %v437_v51 = vpop.f32.mrb[0].mxu1 }
 0x37a   :  { %461 = vst [vmem:[%s754_s5] sm:$0xff] %v437_v51  ;;  %v567_v52 = vpop.f32.mrb[1].mxu1 }
 0x37d   :  { %v442_v53 = vpop.f32.mrb[2].mxu1 }
 0x37e   :  { %462 = vst [vmem:[%s754_s5 + $0x8] sm:$0xff] %v442_v53  ;;  %v570_v54 = vpop.f32.mrb[3].mxu1 }
 0x381   :  { %v447_v55 = vpop.f32.mrb[4].mxu1 }
 0x382   :  { %463 = vst [vmem:[%s754_s5 + $0x10] sm:$0xff] %v447_v55  ;;  %v573_v56 = vpop.f32.mrb[5].mxu1 }
 0x385   :  { %v452_v57 = vpop.f32.mrb[6].mxu1 }
 0x386   :  { %464 = vst [vmem:[%s754_s5 + $0x18] sm:$0xff] %v452_v57  ;;  %v576_v58 = vpop.f32.mrb[7].mxu1 }
 0x389   :  { %v457_v59 = vpop.f32.mrb[8].mxu1 }
 0x38a   :  { %465 = vst [vmem:[%s754_s5 + $0x20] sm:$0xf] %v457_v59  ;;  %v579_v60 = vpop.f32.mrb[9].mxu1 }

</bundles_post_ra>
